<compile_context>
chip_gen: v7x
topology: tpu7x:2x2x1
jax: 0.10.0
libtpu: 0.0.40
codegen_flags: <defaults>
</compile_context>

<pallas_src>
import functools
import math

import jax
import jax.numpy as jnp
from jax.experimental import pallas as pl
from jax.experimental.pallas import tpu as pltpu

NEG_INF = -1e9
LN_EPS = 1e-5
CPAD = 128   # lane-dense classifier slab width: cols [0:C) scores, col C tag flag


def _layernorm(x, gamma, beta):
    mu = jnp.mean(x, axis=-1, keepdims=True)
    var = jnp.mean((x - mu) ** 2, axis=-1, keepdims=True)
    return (x - mu) * jax.lax.rsqrt(var + LN_EPS) * gamma + beta


def encoder_layer_kernel(nheads, n_layers, n_classes, bt, threshold,
                         x_ref, mask_ref,
                         wqkv_ref, bqkv_ref, wo_ref, bo_ref, g1_ref, be1_ref,
                         w1_ref, b1_ref, w2_ref, b2_ref, g2_ref, be2_ref,
                         cw_ref, cb_ref, out_ref, acc_ref, ctx_ref):
    """One encoder layer (grid axis 1) for Bt batch elements (grid axis 0)."""
    l = pl.program_id(1)
    T, E = x_ref.shape[1], x_ref.shape[2]
    H = nheads
    hd = E // H
    rows = bt * T
    scale = 1.0 / math.sqrt(hd)
    bf16 = jnp.bfloat16

    @pl.when(l == 0)
    def _():
        # PE already added in the wrapper; flatten (Bt,T,E) -> (Bt*T,E).
        acc_ref[...] = x_ref[...].reshape(rows, E)

    x = acc_ref[...]                               # (rows, E) f32 residual stream
    xb = x.astype(bf16)

    # ---- fused QKV projection: a single full-width MXU pass ----------------
    qkv = jnp.dot(xb, wqkv_ref[0],
                  preferred_element_type=jnp.float32) + bqkv_ref[0]   # (rows, 3E)

    # ---- attention: per-(batch, head) score/context matmuls ----------------
    # (K = hd contraction is inherent to attention; only the projections were
    #  fused.)  Per-head contexts are written head-major into ctx_ref so the
    #  output projection is one K=E matmul.
    for b in range(bt):
        qkv_b = qkv[b * T:(b + 1) * T]             # (T, 3E) static slice
        mask_b = mask_ref[b]                       # (1, T) additive key-pad mask
        for h in range(H):
            qh = qkv_b[:, h * hd:(h + 1) * hd].astype(bf16)
            kh = qkv_b[:, E + h * hd:E + (h + 1) * hd].astype(bf16)
            vh = qkv_b[:, 2 * E + h * hd:2 * E + (h + 1) * hd].astype(bf16)
            s = jax.lax.dot_general(qh, kh, (((1,), (1,)), ((), ())),
                                    preferred_element_type=jnp.float32)
            s = s * scale + mask_b                 # (T, T)
            s = s - jnp.max(s, axis=-1, keepdims=True)
            p = jnp.exp(s)
            p = p * pl.reciprocal(jnp.sum(p, axis=-1, keepdims=True), approx=True)
            o = jnp.dot(p.astype(bf16), vh, preferred_element_type=jnp.float32)
            ctx_ref[b * T:(b + 1) * T, h * hd:(h + 1) * hd] = o
    ctx = ctx_ref[...]                             # (rows, E) head-major contexts

    # ---- output projection: single K=E matmul ------------------------------
    attn = jnp.dot(ctx.astype(bf16), wo_ref[0],
                   preferred_element_type=jnp.float32) + bo_ref[0]

    x1 = _layernorm(x + attn, g1_ref[0], be1_ref[0])

    # ---- FFN ----------------------------------------------------------------
    h1 = jnp.maximum(
        jnp.dot(x1.astype(bf16), w1_ref[0],
                preferred_element_type=jnp.float32) + b1_ref[0], 0.0)
    h2 = jnp.dot(h1.astype(bf16), w2_ref[0],
                 preferred_element_type=jnp.float32) + b2_ref[0]
    xo = _layernorm(x1 + h2, g2_ref[0], be2_ref[0])
    acc_ref[...] = xo

    # ---- classifier + tagging on the last layer -----------------------------
    @pl.when(l == n_layers - 1)
    def _():
        scores = jnp.dot(xo.astype(bf16), cw_ref[...],
                         preferred_element_type=jnp.float32) + cb_ref[...]  # (rows, CPAD)
        col = jax.lax.broadcasted_iota(jnp.int32, scores.shape, 1)
        valid = col < n_classes
        sm = jnp.where(valid, scores, NEG_INF)
        m = jnp.max(sm, axis=-1, keepdims=True)
        e = jnp.where(valid, jnp.exp(sm - m), 0.0)
        # exact divide: the probability feeds a hard threshold, approx
        # reciprocal could flip borderline tokens
        prob1 = e[:, 1:2] / jnp.sum(e, axis=-1, keepdims=True)
        tag = jnp.where(prob1 > threshold, 1.0, 0.0)           # (rows, 1)
        out_ref[...] = jnp.where(col == n_classes, tag, scores).reshape(bt, T, CPAD)


def sinusoidal_pe(T, E):
    pos = jnp.arange(T, dtype=jnp.float32)[:, None]
    div = jnp.exp(jnp.arange(0, E, 2, dtype=jnp.float32) * (-math.log(10000.0) / E))
    pe = jnp.zeros((T, E), jnp.float32)
    pe = pe.at[:, 0::2].set(jnp.sin(pos * div))
    pe = pe.at[:, 1::2].set(jnp.cos(pos * div))
    return pe


def create_mask(lengths, T):
    # additive key-padding mask: 0 for valid keys, NEG_INF for padded ones
    valid = jnp.arange(T)[None, :] < lengths[:, None]
    return jnp.where(valid, 0.0, NEG_INF).astype(jnp.float32)[:, None, :]   # (B,1,T)


def _pick_bt(B, T):
    """Batch elements per grid step: aim for Bt*T >= 128 rows (fill MXU
    sublanes) while keeping >= 2 steps on the parallel batch axis (v7x TCs)."""
    target = max(1, (128 + T - 1) // T)
    best = 1
    for d in range(1, B + 1):
        if B % d:
            continue
        if d <= target and (B < 2 or B // d >= 2):
            best = d
    return best


@functools.partial(jax.jit, static_argnames=('nheads', 'threshold'))
def _forward_device(xs, lengths, params, *, nheads, threshold):
    B, T, E = xs.shape
    layers = params['layers']
    L = len(layers)
    C = params['cls_w'].shape[1]
    assert C + 1 <= CPAD and E % nheads == 0
    bf16 = jnp.bfloat16

    Bt = _pick_bt(B, T)
    Bsteps = B // Bt

    mask = create_mask(lengths, T)                        # (B, 1, T)
    xs_pe = xs + sinusoidal_pe(T, E)[None]                # PE pre-added (fused in XLA)

    st = lambda name: jnp.stack([lp[name] for lp in layers], axis=0)
    # fused, head-major QKV weight: columns [Q | K | V]
    wqkv = jnp.concatenate([st('wq'), st('wk'), st('wv')], axis=-1).astype(bf16)  # (L,E,3E)
    bqkv = jnp.concatenate([st('bq'), st('bk'), st('bv')], axis=-1)[:, None, :]   # (L,1,3E)
    wo = st('wo').astype(bf16)                                                    # (L,E,E)
    bo = st('bo')[:, None, :]
    g1, be1 = st('g1')[:, None, :], st('be1')[:, None, :]
    w1, b1 = st('w1').astype(bf16), st('b1')[:, None, :]
    w2, b2 = st('w2').astype(bf16), st('b2')[:, None, :]
    g2, be2 = st('g2')[:, None, :], st('be2')[:, None, :]
    # lane-dense classifier weights (padded columns are zero)
    cw = jnp.zeros((E, CPAD), bf16).at[:, :C].set(params['cls_w'].astype(bf16))
    cb = jnp.zeros((1, CPAD), jnp.float32).at[:, :C].set(params['cls_b'][None, :])

    layer_weights = [wqkv, bqkv, wo, bo, g1, be1, w1, b1, w2, b2, g2, be2]

    def layer_spec(w):
        # one layer's slice, streamed along the "arbitrary" layer grid axis
        return pl.BlockSpec((1,) + w.shape[1:],
                            lambda b, l, n=w.ndim - 1: (l,) + (0,) * n)

    in_specs = ([pl.BlockSpec((Bt, T, E), lambda b, l: (b, 0, 0)),
                 pl.BlockSpec((Bt, 1, T), lambda b, l: (b, 0, 0))]
                + [layer_spec(w) for w in layer_weights]
                + [pl.BlockSpec((E, CPAD), lambda b, l: (0, 0)),
                   pl.BlockSpec((1, CPAD), lambda b, l: (0, 0))])

    # VMEM budget: double-buffered per-step blocks + residual/context scratch
    nbytes = lambda a: int(a.size) * a.dtype.itemsize
    step_bytes = (Bt * T * E * 4 + Bt * T * 4
                  + sum(nbytes(w) // L for w in layer_weights)
                  + nbytes(cw) + nbytes(cb) + Bt * T * CPAD * 4)
    vmem_limit = int(min(64 << 20, max(16 << 20,
                                       2 * step_bytes + 2 * Bt * T * E * 4 + (4 << 20))))

    slab = pl.pallas_call(
        functools.partial(encoder_layer_kernel, nheads, L, C, Bt, float(threshold)),
        out_shape=jax.ShapeDtypeStruct((B, T, CPAD), jnp.float32),
        grid=(Bsteps, L),
        in_specs=in_specs,
        out_specs=pl.BlockSpec((Bt, T, CPAD), lambda b, l: (b, 0, 0)),
        scratch_shapes=[pltpu.VMEM((Bt * T, E), jnp.float32),   # residual stream
                        pltpu.VMEM((Bt * T, E), jnp.float32)],  # attention context
        compiler_params=pltpu.CompilerParams(
            dimension_semantics=("parallel", "arbitrary"),
            vmem_limit_bytes=vmem_limit),
    )(xs_pe, mask, *layer_weights, cw, cb)

    scores = slab[..., :C]            # (B, T, C)
    tags = slab[..., C] > 0.5         # (B, T) bool, thresholded inside the kernel
    return scores, tags


def transformer_segmenter_forward(xs, lengths, params, nheads, threshold=0.4):
    """Mirrors Transformer_segmenter.forward (loss_fn='CrossEntropy', eval mode)."""
    scores, tags = _forward_device(xs, lengths, params,
                                   nheads=nheads, threshold=float(threshold))
    # TODO(synk): python list building truncated to each length is host-side glue.
    tags_host = jax.device_get(tags)
    lens_host = jax.device_get(lengths)
    tag_list = [tags_host[i, :int(lens_host[i])].tolist() for i in range(xs.shape[0])]
    return scores, tag_list


def init_params(key, E, H, tagset_size, n_layers):
    def nrm(k, shape, scale=0.05):
        return jax.random.normal(k, shape, jnp.float32) * scale

    layers = []
    for _ in range(n_layers):
        key, *ks = jax.random.split(key, 8)
        layers.append({
            'wq': nrm(ks[0], (E, E)), 'bq': jnp.zeros((E,), jnp.float32),
            'wk': nrm(ks[1], (E, E)), 'bk': jnp.zeros((E,), jnp.float32),
            'wv': nrm(ks[2], (E, E)), 'bv': jnp.zeros((E,), jnp.float32),
            'wo': nrm(ks[3], (E, E)), 'bo': jnp.zeros((E,), jnp.float32),
            'g1': jnp.ones((E,), jnp.float32), 'be1': jnp.zeros((E,), jnp.float32),
            'w1': nrm(ks[4], (E, H)), 'b1': jnp.zeros((H,), jnp.float32),
            'w2': nrm(ks[5], (H, E)), 'b2': jnp.zeros((E,), jnp.float32),
            'g2': jnp.ones((E,), jnp.float32), 'be2': jnp.zeros((E,), jnp.float32),
        })
    key, k1 = jax.random.split(key)
    return {
        'layers': layers,
        'cls_w': nrm(k1, (E, tagset_size), 0.1),
        'cls_b': jnp.zeros((tagset_size,), jnp.float32),
    }


if __name__ == "__main__":
    # small, module-consistent shapes
    B, T = 2, 8
    embedding_dim, hidden_dim = 32, 64
    tagset_size, num_layers, nheads = 2, 2, 4

    key = jax.random.PRNGKey(0)
    kx, kp = jax.random.split(key)
    xs = jax.random.normal(kx, (B, T, embedding_dim), jnp.float32)
    lengths = jnp.array([8, 5], dtype=jnp.int32)
    params = init_params(kp, embedding_dim, hidden_dim, tagset_size, num_layers)

    scores, tag_seq = transformer_segmenter_forward(xs, lengths, params, nheads,
                                                    threshold=0.4)
    jax.block_until_ready(scores)
    assert scores.shape == (B, T, tagset_size)
    assert len(tag_seq) == B and len(tag_seq[0]) == 8 and len(tag_seq[1]) == 5
    print("KERNEL_OK")
</pallas_src>

<mosaic_0001>
module attributes {stable_mosaic.version = 11 : i64} {
  func.func @encoder_layer_kernel(%arg0: i32, %arg1: i32, %arg2: memref<1x8x32xf32, #tpu.memory_space<vmem>>, %arg3: memref<1x1x8xf32, #tpu.memory_space<vmem>>, %arg4: memref<1x32x96xbf16, #tpu.memory_space<vmem>>, %arg5: memref<1x1x96xf32, #tpu.memory_space<vmem>>, %arg6: memref<1x32x32xbf16, #tpu.memory_space<vmem>>, %arg7: memref<1x1x32xf32, #tpu.memory_space<vmem>>, %arg8: memref<1x1x32xf32, #tpu.memory_space<vmem>>, %arg9: memref<1x1x32xf32, #tpu.memory_space<vmem>>, %arg10: memref<1x32x64xbf16, #tpu.memory_space<vmem>>, %arg11: memref<1x1x64xf32, #tpu.memory_space<vmem>>, %arg12: memref<1x64x32xbf16, #tpu.memory_space<vmem>>, %arg13: memref<1x1x32xf32, #tpu.memory_space<vmem>>, %arg14: memref<1x1x32xf32, #tpu.memory_space<vmem>>, %arg15: memref<1x1x32xf32, #tpu.memory_space<vmem>>, %arg16: memref<32x128xbf16, #tpu.memory_space<vmem>>, %arg17: memref<1x128xf32, #tpu.memory_space<vmem>>, %arg18: memref<1x8x128xf32, #tpu.memory_space<vmem>>, %arg19: memref<8x32xf32, #tpu.memory_space<vmem>>, %arg20: memref<8x32xf32, #tpu.memory_space<vmem>>) attributes {dimension_semantics = [#tpu.dimension_semantics<parallel>, #tpu.dimension_semantics<arbitrary>], iteration_bounds = array<i64: 2, 2>, scalar_prefetch = 0 : i64, scratch_operands = 2 : i64, tpu.core_type = #tpu.core_type<tc>, window_params = [{transform_indices = @transform_0, window_bounds = array<i64: 1, 8, 32>}, {transform_indices = @transform_1, window_bounds = array<i64: 1, 1, 8>}, {transform_indices = @transform_2, window_bounds = array<i64: 1, 32, 96>}, {transform_indices = @transform_3, window_bounds = array<i64: 1, 1, 96>}, {transform_indices = @transform_4, window_bounds = array<i64: 1, 32, 32>}, {transform_indices = @transform_5, window_bounds = array<i64: 1, 1, 32>}, {transform_indices = @transform_6, window_bounds = array<i64: 1, 1, 32>}, {transform_indices = @transform_7, window_bounds = array<i64: 1, 1, 32>}, {transform_indices = @transform_8, window_bounds = array<i64: 1, 32, 64>}, {transform_indices = @transform_9, window_bounds = array<i64: 1, 1, 64>}, {transform_indices = @transform_10, window_bounds = array<i64: 1, 64, 32>}, {transform_indices = @transform_11, window_bounds = array<i64: 1, 1, 32>}, {transform_indices = @transform_12, window_bounds = array<i64: 1, 1, 32>}, {transform_indices = @transform_13, window_bounds = array<i64: 1, 1, 32>}, {pipeline_mode = #tpu.pipeline_mode<synchronous>, transform_indices = @transform_14, window_bounds = array<i64: 32, 128>}, {pipeline_mode = #tpu.pipeline_mode<synchronous>, transform_indices = @transform_15, window_bounds = array<i64: 1, 128>}, {transform_indices = @transform_16, window_bounds = array<i64: 1, 8, 128>}]} {
    %c0_i32 = arith.constant 0 : i32
    %0 = arith.cmpi eq, %arg1, %c0_i32 : i32
    %1 = arith.extui %0 : i1 to i32
    %c0_i32_0 = arith.constant 0 : i32
    %2 = arith.cmpi ne, %1, %c0_i32_0 : i32
    scf.if %2 {
      %c0_85 = arith.constant 0 : index
      %c0_86 = arith.constant 0 : index
      %c0_87 = arith.constant 0 : index
      %195 = vector.load %arg2[%c0_85, %c0_86, %c0_87] : memref<1x8x32xf32, #tpu.memory_space<vmem>>, vector<1x8x32xf32>
      %196 = vector.shape_cast %195 : vector<1x8x32xf32> to vector<8x32xf32>
      %c0_88 = arith.constant 0 : index
      %c0_89 = arith.constant 0 : index
      %197 = vector.load %arg19[%c0_88, %c0_89] : memref<8x32xf32, #tpu.memory_space<vmem>>, vector<8x32xf32>
      tpu.vector_store %arg19[%c0_88, %c0_89], %196 {strides = array<i32>} : memref<8x32xf32, #tpu.memory_space<vmem>>, vector<8x32xf32>,
    } else {
    }
    %c0 = arith.constant 0 : index
    %c0_1 = arith.constant 0 : index
    %3 = vector.load %arg19[%c0, %c0_1] : memref<8x32xf32, #tpu.memory_space<vmem>>, vector<8x32xf32>
    %4 = arith.truncf %3 : vector<8x32xf32> to vector<8x32xbf16>
    %c0_2 = arith.constant 0 : index
    %c0_3 = arith.constant 0 : index
    %c0_4 = arith.constant 0 : index
    %5 = vector.load %arg4[%c0_2, %c0_3, %c0_4] : memref<1x32x96xbf16, #tpu.memory_space<vmem>>, vector<1x32x96xbf16>
    %6 = vector.shape_cast %5 : vector<1x32x96xbf16> to vector<32x96xbf16>
    %cst = arith.constant dense<0.000000e+00> : vector<8x96xf32>
    %7 = tpu.matmul %4, %6, %cst {dimension_numbers = #tpu.dot_dimension_numbers<[1], [0], [0], [1], [0, 0, 1, 1], [], []>} : vector<8x32xbf16>, vector<32x96xbf16>, vector<8x96xf32> -> vector<8x96xf32>
    %c0_5 = arith.constant 0 : index
    %c0_6 = arith.constant 0 : index
    %c0_7 = arith.constant 0 : index
    %8 = vector.load %arg5[%c0_5, %c0_6, %c0_7] : memref<1x1x96xf32, #tpu.memory_space<vmem>>, vector<1x1x96xf32>
    %9 = vector.shape_cast %8 : vector<1x1x96xf32> to vector<1x96xf32>
    %10 = vector.broadcast %9 : vector<1x96xf32> to vector<8x96xf32>
    %11 = arith.addf %7, %10 : vector<8x96xf32>
    %c0_8 = arith.constant 0 : index
    %c0_9 = arith.constant 0 : index
    %c0_10 = arith.constant 0 : index
    %12 = vector.load %arg3[%c0_8, %c0_9, %c0_10] : memref<1x1x8xf32, #tpu.memory_space<vmem>>, vector<1x1x8xf32>
    %13 = vector.shape_cast %12 : vector<1x1x8xf32> to vector<1x8xf32>
    %14 = vector.extract_strided_slice %11 {offsets = [0, 0], sizes = [8, 8], strides = [1, 1]} : vector<8x96xf32> to vector<8x8xf32>
    %15 = arith.truncf %14 : vector<8x8xf32> to vector<8x8xbf16>
    %16 = vector.extract_strided_slice %11 {offsets = [0, 32], sizes = [8, 8], strides = [1, 1]} : vector<8x96xf32> to vector<8x8xf32>
    %17 = arith.truncf %16 : vector<8x8xf32> to vector<8x8xbf16>
    %18 = vector.extract_strided_slice %11 {offsets = [0, 64], sizes = [8, 8], strides = [1, 1]} : vector<8x96xf32> to vector<8x8xf32>
    %19 = arith.truncf %18 : vector<8x8xf32> to vector<8x8xbf16>
    %cst_11 = arith.constant dense<0.000000e+00> : vector<8x8xf32>
    %20 = tpu.matmul %15, %17, %cst_11 {dimension_numbers = #tpu.dot_dimension_numbers<[1], [1], [0], [0], [0, 0, 1, 0], [], []>} : vector<8x8xbf16>, vector<8x8xbf16>, vector<8x8xf32> -> vector<8x8xf32>
    %cst_12 = arith.constant 0.353553385 : f32
    %21 = vector.broadcast %cst_12 : f32 to vector<8x8xf32>
    %22 = arith.mulf %20, %21 : vector<8x8xf32>
    %23 = vector.broadcast %13 : vector<1x8xf32> to vector<8x8xf32>
    %24 = arith.addf %22, %23 : vector<8x8xf32>
    %cst_13 = arith.constant dense<0xFF800000> : vector<8xf32>
    %25 = vector.multi_reduction <maximumf>, %24, %cst_13 [1] : vector<8x8xf32> to vector<8xf32>
    %26 = vector.shape_cast %25 : vector<8xf32> to vector<8x1xf32>
    %27 = vector.broadcast %26 : vector<8x1xf32> to vector<8x8xf32>
    %28 = arith.subf %24, %27 : vector<8x8xf32>
    %29 = math.exp %28 : vector<8x8xf32>
    %cst_14 = arith.constant dense<0.000000e+00> : vector<8xf32>
    %30 = vector.multi_reduction <add>, %29, %cst_14 [1] : vector<8x8xf32> to vector<8xf32>
    %31 = vector.shape_cast %30 : vector<8xf32> to vector<8x1xf32>
    %32 = tpu.reciprocal %31 {approx = true} : vector<8x1xf32> -> vector<8x1xf32>
    %33 = vector.broadcast %32 : vector<8x1xf32> to vector<8x8xf32>
    %34 = arith.mulf %29, %33 : vector<8x8xf32>
    %35 = arith.truncf %34 : vector<8x8xf32> to vector<8x8xbf16>
    %cst_15 = arith.constant dense<0.000000e+00> : vector<8x8xf32>
    %36 = tpu.matmul %35, %19, %cst_15 {dimension_numbers = #tpu.dot_dimension_numbers<[1], [0], [0], [1], [0, 0, 1, 1], [], []>} : vector<8x8xbf16>, vector<8x8xbf16>, vector<8x8xf32> -> vector<8x8xf32>
    %c0_16 = arith.constant 0 : index
    %c0_17 = arith.constant 0 : index
    %37 = vector.load %arg20[%c0_16, %c0_17] : memref<8x32xf32, #tpu.memory_space<vmem>>, vector<8x8xf32>
    tpu.vector_store %arg20[%c0_16, %c0_17], %36 {strides = array<i32>} : memref<8x32xf32, #tpu.memory_space<vmem>>, vector<8x8xf32>,
    %38 = vector.extract_strided_slice %11 {offsets = [0, 8], sizes = [8, 8], strides = [1, 1]} : vector<8x96xf32> to vector<8x8xf32>
    %39 = arith.truncf %38 : vector<8x8xf32> to vector<8x8xbf16>
    %40 = vector.extract_strided_slice %11 {offsets = [0, 40], sizes = [8, 8], strides = [1, 1]} : vector<8x96xf32> to vector<8x8xf32>
    %41 = arith.truncf %40 : vector<8x8xf32> to vector<8x8xbf16>
    %42 = vector.extract_strided_slice %11 {offsets = [0, 72], sizes = [8, 8], strides = [1, 1]} : vector<8x96xf32> to vector<8x8xf32>
    %43 = arith.truncf %42 : vector<8x8xf32> to vector<8x8xbf16>
    %cst_18 = arith.constant dense<0.000000e+00> : vector<8x8xf32>
    %44 = tpu.matmul %39, %41, %cst_18 {dimension_numbers = #tpu.dot_dimension_numbers<[1], [1], [0], [0], [0, 0, 1, 0], [], []>} : vector<8x8xbf16>, vector<8x8xbf16>, vector<8x8xf32> -> vector<8x8xf32>
    %cst_19 = arith.constant 0.353553385 : f32
    %45 = vector.broadcast %cst_19 : f32 to vector<8x8xf32>
    %46 = arith.mulf %44, %45 : vector<8x8xf32>
    %47 = vector.broadcast %13 : vector<1x8xf32> to vector<8x8xf32>
    %48 = arith.addf %46, %47 : vector<8x8xf32>
    %cst_20 = arith.constant dense<0xFF800000> : vector<8xf32>
    %49 = vector.multi_reduction <maximumf>, %48, %cst_20 [1] : vector<8x8xf32> to vector<8xf32>
    %50 = vector.shape_cast %49 : vector<8xf32> to vector<8x1xf32>
    %51 = vector.broadcast %50 : vector<8x1xf32> to vector<8x8xf32>
    %52 = arith.subf %48, %51 : vector<8x8xf32>
    %53 = math.exp %52 : vector<8x8xf32>
    %cst_21 = arith.constant dense<0.000000e+00> : vector<8xf32>
    %54 = vector.multi_reduction <add>, %53, %cst_21 [1] : vector<8x8xf32> to vector<8xf32>
    %55 = vector.shape_cast %54 : vector<8xf32> to vector<8x1xf32>
    %56 = tpu.reciprocal %55 {approx = true} : vector<8x1xf32> -> vector<8x1xf32>
    %57 = vector.broadcast %56 : vector<8x1xf32> to vector<8x8xf32>
    %58 = arith.mulf %53, %57 : vector<8x8xf32>
    %59 = arith.truncf %58 : vector<8x8xf32> to vector<8x8xbf16>
    %cst_22 = arith.constant dense<0.000000e+00> : vector<8x8xf32>
    %60 = tpu.matmul %59, %43, %cst_22 {dimension_numbers = #tpu.dot_dimension_numbers<[1], [0], [0], [1], [0, 0, 1, 1], [], []>} : vector<8x8xbf16>, vector<8x8xbf16>, vector<8x8xf32> -> vector<8x8xf32>
    %c0_23 = arith.constant 0 : index
    %c8 = arith.constant 8 : index
    %61 = vector.load %arg20[%c0_23, %c8] : memref<8x32xf32, #tpu.memory_space<vmem>>, vector<8x8xf32>
    tpu.vector_store %arg20[%c0_23, %c8], %60 {strides = array<i32>} : memref<8x32xf32, #tpu.memory_space<vmem>>, vector<8x8xf32>,
    %62 = vector.extract_strided_slice %11 {offsets = [0, 16], sizes = [8, 8], strides = [1, 1]} : vector<8x96xf32> to vector<8x8xf32>
    %63 = arith.truncf %62 : vector<8x8xf32> to vector<8x8xbf16>
    %64 = vector.extract_strided_slice %11 {offsets = [0, 48], sizes = [8, 8], strides = [1, 1]} : vector<8x96xf32> to vector<8x8xf32>
    %65 = arith.truncf %64 : vector<8x8xf32> to vector<8x8xbf16>
    %66 = vector.extract_strided_slice %11 {offsets = [0, 80], sizes = [8, 8], strides = [1, 1]} : vector<8x96xf32> to vector<8x8xf32>
    %67 = arith.truncf %66 : vector<8x8xf32> to vector<8x8xbf16>
    %cst_24 = arith.constant dense<0.000000e+00> : vector<8x8xf32>
    %68 = tpu.matmul %63, %65, %cst_24 {dimension_numbers = #tpu.dot_dimension_numbers<[1], [1], [0], [0], [0, 0, 1, 0], [], []>} : vector<8x8xbf16>, vector<8x8xbf16>, vector<8x8xf32> -> vector<8x8xf32>
    %cst_25 = arith.constant 0.353553385 : f32
    %69 = vector.broadcast %cst_25 : f32 to vector<8x8xf32>
    %70 = arith.mulf %68, %69 : vector<8x8xf32>
    %71 = vector.broadcast %13 : vector<1x8xf32> to vector<8x8xf32>
    %72 = arith.addf %70, %71 : vector<8x8xf32>
    %cst_26 = arith.constant dense<0xFF800000> : vector<8xf32>
    %73 = vector.multi_reduction <maximumf>, %72, %cst_26 [1] : vector<8x8xf32> to vector<8xf32>
    %74 = vector.shape_cast %73 : vector<8xf32> to vector<8x1xf32>
    %75 = vector.broadcast %74 : vector<8x1xf32> to vector<8x8xf32>
    %76 = arith.subf %72, %75 : vector<8x8xf32>
    %77 = math.exp %76 : vector<8x8xf32>
    %cst_27 = arith.constant dense<0.000000e+00> : vector<8xf32>
    %78 = vector.multi_reduction <add>, %77, %cst_27 [1] : vector<8x8xf32> to vector<8xf32>
    %79 = vector.shape_cast %78 : vector<8xf32> to vector<8x1xf32>
    %80 = tpu.reciprocal %79 {approx = true} : vector<8x1xf32> -> vector<8x1xf32>
    %81 = vector.broadcast %80 : vector<8x1xf32> to vector<8x8xf32>
    %82 = arith.mulf %77, %81 : vector<8x8xf32>
    %83 = arith.truncf %82 : vector<8x8xf32> to vector<8x8xbf16>
    %cst_28 = arith.constant dense<0.000000e+00> : vector<8x8xf32>
    %84 = tpu.matmul %83, %67, %cst_28 {dimension_numbers = #tpu.dot_dimension_numbers<[1], [0], [0], [1], [0, 0, 1, 1], [], []>} : vector<8x8xbf16>, vector<8x8xbf16>, vector<8x8xf32> -> vector<8x8xf32>
    %c0_29 = arith.constant 0 : index
    %c16 = arith.constant 16 : index
    %85 = vector.load %arg20[%c0_29, %c16] : memref<8x32xf32, #tpu.memory_space<vmem>>, vector<8x8xf32>
    tpu.vector_store %arg20[%c0_29, %c16], %84 {strides = array<i32>} : memref<8x32xf32, #tpu.memory_space<vmem>>, vector<8x8xf32>,
    %86 = vector.extract_strided_slice %11 {offsets = [0, 24], sizes = [8, 8], strides = [1, 1]} : vector<8x96xf32> to vector<8x8xf32>
    %87 = arith.truncf %86 : vector<8x8xf32> to vector<8x8xbf16>
    %88 = vector.extract_strided_slice %11 {offsets = [0, 56], sizes = [8, 8], strides = [1, 1]} : vector<8x96xf32> to vector<8x8xf32>
    %89 = arith.truncf %88 : vector<8x8xf32> to vector<8x8xbf16>
    %90 = vector.extract_strided_slice %11 {offsets = [0, 88], sizes = [8, 8], strides = [1, 1]} : vector<8x96xf32> to vector<8x8xf32>
    %91 = arith.truncf %90 : vector<8x8xf32> to vector<8x8xbf16>
    %cst_30 = arith.constant dense<0.000000e+00> : vector<8x8xf32>
    %92 = tpu.matmul %87, %89, %cst_30 {dimension_numbers = #tpu.dot_dimension_numbers<[1], [1], [0], [0], [0, 0, 1, 0], [], []>} : vector<8x8xbf16>, vector<8x8xbf16>, vector<8x8xf32> -> vector<8x8xf32>
    %cst_31 = arith.constant 0.353553385 : f32
    %93 = vector.broadcast %cst_31 : f32 to vector<8x8xf32>
    %94 = arith.mulf %92, %93 : vector<8x8xf32>
    %95 = vector.broadcast %13 : vector<1x8xf32> to vector<8x8xf32>
    %96 = arith.addf %94, %95 : vector<8x8xf32>
    %cst_32 = arith.constant dense<0xFF800000> : vector<8xf32>
    %97 = vector.multi_reduction <maximumf>, %96, %cst_32 [1] : vector<8x8xf32> to vector<8xf32>
    %98 = vector.shape_cast %97 : vector<8xf32> to vector<8x1xf32>
    %99 = vector.broadcast %98 : vector<8x1xf32> to vector<8x8xf32>
    %100 = arith.subf %96, %99 : vector<8x8xf32>
    %101 = math.exp %100 : vector<8x8xf32>
    %cst_33 = arith.constant dense<0.000000e+00> : vector<8xf32>
    %102 = vector.multi_reduction <add>, %101, %cst_33 [1] : vector<8x8xf32> to vector<8xf32>
    %103 = vector.shape_cast %102 : vector<8xf32> to vector<8x1xf32>
    %104 = tpu.reciprocal %103 {approx = true} : vector<8x1xf32> -> vector<8x1xf32>
    %105 = vector.broadcast %104 : vector<8x1xf32> to vector<8x8xf32>
    %106 = arith.mulf %101, %105 : vector<8x8xf32>
    %107 = arith.truncf %106 : vector<8x8xf32> to vector<8x8xbf16>
    %cst_34 = arith.constant dense<0.000000e+00> : vector<8x8xf32>
    %108 = tpu.matmul %107, %91, %cst_34 {dimension_numbers = #tpu.dot_dimension_numbers<[1], [0], [0], [1], [0, 0, 1, 1], [], []>} : vector<8x8xbf16>, vector<8x8xbf16>, vector<8x8xf32> -> vector<8x8xf32>
    %c0_35 = arith.constant 0 : index
    %c24 = arith.constant 24 : index
    %109 = vector.load %arg20[%c0_35, %c24] : memref<8x32xf32, #tpu.memory_space<vmem>>, vector<8x8xf32>
    tpu.vector_store %arg20[%c0_35, %c24], %108 {strides = array<i32>} : memref<8x32xf32, #tpu.memory_space<vmem>>, vector<8x8xf32>,
    %c0_36 = arith.constant 0 : index
    %c0_37 = arith.constant 0 : index
    %110 = vector.load %arg20[%c0_36, %c0_37] : memref<8x32xf32, #tpu.memory_space<vmem>>, vector<8x32xf32>
    %111 = arith.truncf %110 : vector<8x32xf32> to vector<8x32xbf16>
    %c0_38 = arith.constant 0 : index
    %c0_39 = arith.constant 0 : index
    %c0_40 = arith.constant 0 : index
    %112 = vector.load %arg6[%c0_38, %c0_39, %c0_40] : memref<1x32x32xbf16, #tpu.memory_space<vmem>>, vector<1x32x32xbf16>
    %113 = vector.shape_cast %112 : vector<1x32x32xbf16> to vector<32x32xbf16>
    %cst_41 = arith.constant dense<0.000000e+00> : vector<8x32xf32>
    %114 = tpu.matmul %111, %113, %cst_41 {dimension_numbers = #tpu.dot_dimension_numbers<[1], [0], [0], [1], [0, 0, 1, 1], [], []>} : vector<8x32xbf16>, vector<32x32xbf16>, vector<8x32xf32> -> vector<8x32xf32>
    %c0_42 = arith.constant 0 : index
    %c0_43 = arith.constant 0 : index
    %c0_44 = arith.constant 0 : index
    %115 = vector.load %arg7[%c0_42, %c0_43, %c0_44] : memref<1x1x32xf32, #tpu.memory_space<vmem>>, vector<1x1x32xf32>
    %116 = vector.shape_cast %115 : vector<1x1x32xf32> to vector<1x32xf32>
    %117 = vector.broadcast %116 : vector<1x32xf32> to vector<8x32xf32>
    %118 = arith.addf %114, %117 : vector<8x32xf32>
    %119 = arith.addf %3, %118 : vector<8x32xf32>
    %c0_45 = arith.constant 0 : index
    %c0_46 = arith.constant 0 : index
    %c0_47 = arith.constant 0 : index
    %120 = vector.load %arg8[%c0_45, %c0_46, %c0_47] : memref<1x1x32xf32, #tpu.memory_space<vmem>>, vector<1x1x32xf32>
    %121 = vector.shape_cast %120 : vector<1x1x32xf32> to vector<1x32xf32>
    %c0_48 = arith.constant 0 : index
    %c0_49 = arith.constant 0 : index
    %c0_50 = arith.constant 0 : index
    %122 = vector.load %arg9[%c0_48, %c0_49, %c0_50] : memref<1x1x32xf32, #tpu.memory_space<vmem>>, vector<1x1x32xf32>
    %123 = vector.shape_cast %122 : vector<1x1x32xf32> to vector<1x32xf32>
    %cst_51 = arith.constant dense<0.000000e+00> : vector<8xf32>
    %124 = vector.multi_reduction <add>, %119, %cst_51 [1] : vector<8x32xf32> to vector<8xf32>
    %125 = vector.shape_cast %124 : vector<8xf32> to vector<8x1xf32>
    %cst_52 = arith.constant 3.200000e+01 : f32
    %126 = vector.broadcast %cst_52 : f32 to vector<8x1xf32>
    %127 = arith.divf %125, %126 : vector<8x1xf32>
    %128 = vector.broadcast %127 : vector<8x1xf32> to vector<8x32xf32>
    %129 = arith.subf %119, %128 : vector<8x32xf32>
    %130 = arith.mulf %129, %129 : vector<8x32xf32>
    %cst_53 = arith.constant dense<0.000000e+00> : vector<8xf32>
    %131 = vector.multi_reduction <add>, %130, %cst_53 [1] : vector<8x32xf32> to vector<8xf32>
    %132 = vector.shape_cast %131 : vector<8xf32> to vector<8x1xf32>
    %cst_54 = arith.constant 3.200000e+01 : f32
    %133 = vector.broadcast %cst_54 : f32 to vector<8x1xf32>
    %134 = arith.divf %132, %133 : vector<8x1xf32>
    %135 = vector.broadcast %127 : vector<8x1xf32> to vector<8x32xf32>
    %136 = arith.subf %119, %135 : vector<8x32xf32>
    %cst_55 = arith.constant 9.99999974E-6 : f32
    %137 = vector.broadcast %cst_55 : f32 to vector<8x1xf32>
    %138 = arith.addf %134, %137 : vector<8x1xf32>
    %139 = math.rsqrt %138 : vector<8x1xf32>
    %140 = vector.broadcast %139 : vector<8x1xf32> to vector<8x32xf32>
    %141 = arith.mulf %136, %140 : vector<8x32xf32>
    %142 = vector.broadcast %121 : vector<1x32xf32> to vector<8x32xf32>
    %143 = arith.mulf %141, %142 : vector<8x32xf32>
    %144 = vector.broadcast %123 : vector<1x32xf32> to vector<8x32xf32>
    %145 = arith.addf %143, %144 : vector<8x32xf32>
    %146 = arith.truncf %145 : vector<8x32xf32> to vector<8x32xbf16>
    %c0_56 = arith.constant 0 : index
    %c0_57 = arith.constant 0 : index
    %c0_58 = arith.constant 0 : index
    %147 = vector.load %arg10[%c0_56, %c0_57, %c0_58] : memref<1x32x64xbf16, #tpu.memory_space<vmem>>, vector<1x32x64xbf16>
    %148 = vector.shape_cast %147 : vector<1x32x64xbf16> to vector<32x64xbf16>
    %cst_59 = arith.constant dense<0.000000e+00> : vector<8x64xf32>
    %149 = tpu.matmul %146, %148, %cst_59 {dimension_numbers = #tpu.dot_dimension_numbers<[1], [0], [0], [1], [0, 0, 1, 1], [], []>} : vector<8x32xbf16>, vector<32x64xbf16>, vector<8x64xf32> -> vector<8x64xf32>
    %c0_60 = arith.constant 0 : index
    %c0_61 = arith.constant 0 : index
    %c0_62 = arith.constant 0 : index
    %150 = vector.load %arg11[%c0_60, %c0_61, %c0_62] : memref<1x1x64xf32, #tpu.memory_space<vmem>>, vector<1x1x64xf32>
    %151 = vector.shape_cast %150 : vector<1x1x64xf32> to vector<1x64xf32>
    %152 = vector.broadcast %151 : vector<1x64xf32> to vector<8x64xf32>
    %153 = arith.addf %149, %152 : vector<8x64xf32>
    %cst_63 = arith.constant 0.000000e+00 : f32
    %154 = vector.broadcast %cst_63 : f32 to vector<8x64xf32>
    %155 = arith.maximumf %153, %154 : vector<8x64xf32>
    %156 = arith.truncf %155 : vector<8x64xf32> to vector<8x64xbf16>
    %c0_64 = arith.constant 0 : index
    %c0_65 = arith.constant 0 : index
    %c0_66 = arith.constant 0 : index
    %157 = vector.load %arg12[%c0_64, %c0_65, %c0_66] : memref<1x64x32xbf16, #tpu.memory_space<vmem>>, vector<1x64x32xbf16>
    %158 = vector.shape_cast %157 : vector<1x64x32xbf16> to vector<64x32xbf16>
    %cst_67 = arith.constant dense<0.000000e+00> : vector<8x32xf32>
    %159 = tpu.matmul %156, %158, %cst_67 {dimension_numbers = #tpu.dot_dimension_numbers<[1], [0], [0], [1], [0, 0, 1, 1], [], []>} : vector<8x64xbf16>, vector<64x32xbf16>, vector<8x32xf32> -> vector<8x32xf32>
    %c0_68 = arith.constant 0 : index
    %c0_69 = arith.constant 0 : index
    %c0_70 = arith.constant 0 : index
    %160 = vector.load %arg13[%c0_68, %c0_69, %c0_70] : memref<1x1x32xf32, #tpu.memory_space<vmem>>, vector<1x1x32xf32>
    %161 = vector.shape_cast %160 : vector<1x1x32xf32> to vector<1x32xf32>
    %162 = vector.broadcast %161 : vector<1x32xf32> to vector<8x32xf32>
    %163 = arith.addf %159, %162 : vector<8x32xf32>
    %164 = arith.addf %145, %163 : vector<8x32xf32>
    %c0_71 = arith.constant 0 : index
    %c0_72 = arith.constant 0 : index
    %c0_73 = arith.constant 0 : index
    %165 = vector.load %arg14[%c0_71, %c0_72, %c0_73] : memref<1x1x32xf32, #tpu.memory_space<vmem>>, vector<1x1x32xf32>
    %166 = vector.shape_cast %165 : vector<1x1x32xf32> to vector<1x32xf32>
    %c0_74 = arith.constant 0 : index
    %c0_75 = arith.constant 0 : index
    %c0_76 = arith.constant 0 : index
    %167 = vector.load %arg15[%c0_74, %c0_75, %c0_76] : memref<1x1x32xf32, #tpu.memory_space<vmem>>, vector<1x1x32xf32>
    %168 = vector.shape_cast %167 : vector<1x1x32xf32> to vector<1x32xf32>
    %cst_77 = arith.constant dense<0.000000e+00> : vector<8xf32>
    %169 = vector.multi_reduction <add>, %164, %cst_77 [1] : vector<8x32xf32> to vector<8xf32>
    %170 = vector.shape_cast %169 : vector<8xf32> to vector<8x1xf32>
    %cst_78 = arith.constant 3.200000e+01 : f32
    %171 = vector.broadcast %cst_78 : f32 to vector<8x1xf32>
    %172 = arith.divf %170, %171 : vector<8x1xf32>
    %173 = vector.broadcast %172 : vector<8x1xf32> to vector<8x32xf32>
    %174 = arith.subf %164, %173 : vector<8x32xf32>
    %175 = arith.mulf %174, %174 : vector<8x32xf32>
    %cst_79 = arith.constant dense<0.000000e+00> : vector<8xf32>
    %176 = vector.multi_reduction <add>, %175, %cst_79 [1] : vector<8x32xf32> to vector<8xf32>
    %177 = vector.shape_cast %176 : vector<8xf32> to vector<8x1xf32>
    %cst_80 = arith.constant 3.200000e+01 : f32
    %178 = vector.broadcast %cst_80 : f32 to vector<8x1xf32>
    %179 = arith.divf %177, %178 : vector<8x1xf32>
    %180 = vector.broadcast %172 : vector<8x1xf32> to vector<8x32xf32>
    %181 = arith.subf %164, %180 : vector<8x32xf32>
    %cst_81 = arith.constant 9.99999974E-6 : f32
    %182 = vector.broadcast %cst_81 : f32 to vector<8x1xf32>
    %183 = arith.addf %179, %182 : vector<8x1xf32>
    %184 = math.rsqrt %183 : vector<8x1xf32>
    %185 = vector.broadcast %184 : vector<8x1xf32> to vector<8x32xf32>
    %186 = arith.mulf %181, %185 : vector<8x32xf32>
    %187 = vector.broadcast %166 : vector<1x32xf32> to vector<8x32xf32>
    %188 = arith.mulf %186, %187 : vector<8x32xf32>
    %189 = vector.broadcast %168 : vector<1x32xf32> to vector<8x32xf32>
    %190 = arith.addf %188, %189 : vector<8x32xf32>
    %c0_82 = arith.constant 0 : index
    %c0_83 = arith.constant 0 : index
    %191 = vector.load %arg19[%c0_82, %c0_83] : memref<8x32xf32, #tpu.memory_space<vmem>>, vector<8x32xf32>
    tpu.vector_store %arg19[%c0_82, %c0_83], %190 {strides = array<i32>} : memref<8x32xf32, #tpu.memory_space<vmem>>, vector<8x32xf32>,
    %c1_i32 = arith.constant 1 : i32
    %192 = arith.cmpi eq, %arg1, %c1_i32 : i32
    %193 = arith.extui %192 : i1 to i32
    %c0_i32_84 = arith.constant 0 : i32
    %194 = arith.cmpi ne, %193, %c0_i32_84 : i32
    scf.if %194 {
      %195 = arith.truncf %190 : vector<8x32xf32> to vector<8x32xbf16>
      %c0_85 = arith.constant 0 : index
      %c0_86 = arith.constant 0 : index
      %196 = vector.load %arg16[%c0_85, %c0_86] : memref<32x128xbf16, #tpu.memory_space<vmem>>, vector<32x128xbf16>
      %cst_87 = arith.constant dense<0.000000e+00> : vector<8x128xf32>
      %197 = tpu.matmul %195, %196, %cst_87 {dimension_numbers = #tpu.dot_dimension_numbers<[1], [0], [0], [1], [0, 0, 1, 1], [], []>} : vector<8x32xbf16>, vector<32x128xbf16>, vector<8x128xf32> -> vector<8x128xf32>
      %c0_88 = arith.constant 0 : index
      %c0_89 = arith.constant 0 : index
      %198 = vector.load %arg17[%c0_88, %c0_89] : memref<1x128xf32, #tpu.memory_space<vmem>>, vector<1x128xf32>
      %199 = vector.broadcast %198 : vector<1x128xf32> to vector<8x128xf32>
      %200 = arith.addf %197, %199 : vector<8x128xf32>
      %201 = tpu.iota {dimensions = array<i32: 1>} : vector<8x128xi32>
      %c2_i32 = arith.constant 2 : i32
      %202 = vector.broadcast %c2_i32 : i32 to vector<8x128xi32>
      %203 = arith.cmpi slt, %201, %202 : vector<8x128xi32>
      %cst_90 = arith.constant -1.000000e+09 : f32
      %204 = vector.broadcast %cst_90 : f32 to vector<8x128xf32>
      %205 = arith.select %203, %200, %204 : vector<8x128xi1>, vector<8x128xf32>
      %cst_91 = arith.constant dense<0xFF800000> : vector<8xf32>
      %206 = vector.multi_reduction <maximumf>, %205, %cst_91 [1] : vector<8x128xf32> to vector<8xf32>
      %207 = vector.shape_cast %206 : vector<8xf32> to vector<8x1xf32>
      %208 = vector.broadcast %207 : vector<8x1xf32> to vector<8x128xf32>
      %209 = arith.subf %205, %208 : vector<8x128xf32>
      %210 = math.exp %209 : vector<8x128xf32>
      %cst_92 = arith.constant 0.000000e+00 : f32
      %211 = vector.broadcast %cst_92 : f32 to vector<8x128xf32>
      %212 = arith.select %203, %210, %211 : vector<8x128xi1>, vector<8x128xf32>
      %213 = vector.extract_strided_slice %212 {offsets = [0, 1], sizes = [8, 1], strides = [1, 1]} : vector<8x128xf32> to vector<8x1xf32>
      %cst_93 = arith.constant dense<0.000000e+00> : vector<8xf32>
      %214 = vector.multi_reduction <add>, %212, %cst_93 [1] : vector<8x128xf32> to vector<8xf32>
      %215 = vector.shape_cast %214 : vector<8xf32> to vector<8x1xf32>
      %216 = arith.divf %213, %215 : vector<8x1xf32>
      %cst_94 = arith.constant 4.000000e-01 : f32
      %217 = vector.broadcast %cst_94 : f32 to vector<8x1xf32>
      %218 = arith.cmpf ogt, %216, %217 : vector<8x1xf32>
      %cst_95 = arith.constant 1.000000e+00 : f32
      %cst_96 = arith.constant 0.000000e+00 : f32
      %219 = vector.broadcast %cst_95 : f32 to vector<8x1xf32>
      %220 = vector.broadcast %cst_96 : f32 to vector<8x1xf32>
      %221 = arith.select %218, %219, %220 : vector<8x1xi1>, vector<8x1xf32>
      %c2_i32_97 = arith.constant 2 : i32
      %222 = vector.broadcast %c2_i32_97 : i32 to vector<8x128xi32>
      %223 = arith.cmpi eq, %201, %222 : vector<8x128xi32>
      %224 = vector.shape_cast %221 : vector<8x1xf32> to vector<8x1xf32>
      %225 = vector.broadcast %224 : vector<8x1xf32> to vector<8x128xf32>
      %226 = arith.select %223, %225, %200 : vector<8x128xi1>, vector<8x128xf32>
      %227 = vector.shape_cast %226 : vector<8x128xf32> to vector<1x8x128xf32>
      %c0_98 = arith.constant 0 : index
      %c0_99 = arith.constant 0 : index
      %c0_100 = arith.constant 0 : index
      %228 = vector.load %arg18[%c0_98, %c0_99, %c0_100] : memref<1x8x128xf32, #tpu.memory_space<vmem>>, vector<1x8x128xf32>
      tpu.vector_store %arg18[%c0_98, %c0_99, %c0_100], %227 {strides = array<i32>} : memref<1x8x128xf32, #tpu.memory_space<vmem>>, vector<1x8x128xf32>,
    } else {
    }
    return
  }
  func.func @transform_0(%arg0: i32, %arg1: i32) -> (i32, i32, i32) {
    %c0_i32 = arith.constant 0 : i32
    %c0_i32_0 = arith.constant 0 : i32
    %c0_i32_1 = arith.constant 0 : i32
    return %arg0, %c0_i32, %c0_i32_0 : i32, i32, i32
  }
  func.func @transform_1(%arg0: i32, %arg1: i32) -> (i32, i32, i32) {
    %c0_i32 = arith.constant 0 : i32
    %c0_i32_0 = arith.constant 0 : i32
    %c0_i32_1 = arith.constant 0 : i32
    return %arg0, %c0_i32, %c0_i32_0 : i32, i32, i32
  }
  func.func @transform_2(%arg0: i32, %arg1: i32) -> (i32, i32, i32) {
    %c0_i32 = arith.constant 0 : i32
    %c0_i32_0 = arith.constant 0 : i32
    %c0_i32_1 = arith.constant 0 : i32
    return %arg1, %c0_i32, %c0_i32_0 : i32, i32, i32
  }
  func.func @transform_3(%arg0: i32, %arg1: i32) -> (i32, i32, i32) {
    %c0_i32 = arith.constant 0 : i32
    %c0_i32_0 = arith.constant 0 : i32
    %c0_i32_1 = arith.constant 0 : i32
    return %arg1, %c0_i32, %c0_i32_0 : i32, i32, i32
  }
  func.func @transform_4(%arg0: i32, %arg1: i32) -> (i32, i32, i32) {
    %c0_i32 = arith.constant 0 : i32
    %c0_i32_0 = arith.constant 0 : i32
    %c0_i32_1 = arith.constant 0 : i32
    return %arg1, %c0_i32, %c0_i32_0 : i32, i32, i32
  }
  func.func @transform_5(%arg0: i32, %arg1: i32) -> (i32, i32, i32) {
    %c0_i32 = arith.constant 0 : i32
    %c0_i32_0 = arith.constant 0 : i32
    %c0_i32_1 = arith.constant 0 : i32
    return %arg1, %c0_i32, %c0_i32_0 : i32, i32, i32
  }
  func.func @transform_6(%arg0: i32, %arg1: i32) -> (i32, i32, i32) {
    %c0_i32 = arith.constant 0 : i32
    %c0_i32_0 = arith.constant 0 : i32
    %c0_i32_1 = arith.constant 0 : i32
    return %arg1, %c0_i32, %c0_i32_0 : i32, i32, i32
  }
  func.func @transform_7(%arg0: i32, %arg1: i32) -> (i32, i32, i32) {
    %c0_i32 = arith.constant 0 : i32
    %c0_i32_0 = arith.constant 0 : i32
    %c0_i32_1 = arith.constant 0 : i32
    return %arg1, %c0_i32, %c0_i32_0 : i32, i32, i32
  }
  func.func @transform_8(%arg0: i32, %arg1: i32) -> (i32, i32, i32) {
    %c0_i32 = arith.constant 0 : i32
    %c0_i32_0 = arith.constant 0 : i32
    %c0_i32_1 = arith.constant 0 : i32
    return %arg1, %c0_i32, %c0_i32_0 : i32, i32, i32
  }
  func.func @transform_9(%arg0: i32, %arg1: i32) -> (i32, i32, i32) {
    %c0_i32 = arith.constant 0 : i32
    %c0_i32_0 = arith.constant 0 : i32
    %c0_i32_1 = arith.constant 0 : i32
    return %arg1, %c0_i32, %c0_i32_0 : i32, i32, i32
  }
  func.func @transform_10(%arg0: i32, %arg1: i32) -> (i32, i32, i32) {
    %c0_i32 = arith.constant 0 : i32
    %c0_i32_0 = arith.constant 0 : i32
    %c0_i32_1 = arith.constant 0 : i32
    return %arg1, %c0_i32, %c0_i32_0 : i32, i32, i32
  }
  func.func @transform_11(%arg0: i32, %arg1: i32) -> (i32, i32, i32) {
    %c0_i32 = arith.constant 0 : i32
    %c0_i32_0 = arith.constant 0 : i32
    %c0_i32_1 = arith.constant 0 : i32
    return %arg1, %c0_i32, %c0_i32_0 : i32, i32, i32
  }
  func.func @transform_12(%arg0: i32, %arg1: i32) -> (i32, i32, i32) {
    %c0_i32 = arith.constant 0 : i32
    %c0_i32_0 = arith.constant 0 : i32
    %c0_i32_1 = arith.constant 0 : i32
    return %arg1, %c0_i32, %c0_i32_0 : i32, i32, i32
  }
  func.func @transform_13(%arg0: i32, %arg1: i32) -> (i32, i32, i32) {
    %c0_i32 = arith.constant 0 : i32
    %c0_i32_0 = arith.constant 0 : i32
    %c0_i32_1 = arith.constant 0 : i32
    return %arg1, %c0_i32, %c0_i32_0 : i32, i32, i32
  }
  func.func @transform_14(%arg0: i32, %arg1: i32) -> (i32, i32) {
    %c0_i32 = arith.constant 0 : i32
    %c0_i32_0 = arith.constant 0 : i32
    %c0_i32_1 = arith.constant 0 : i32
    return %c0_i32, %c0_i32_0 : i32, i32
  }
  func.func @transform_15(%arg0: i32, %arg1: i32) -> (i32, i32) {
    %c0_i32 = arith.constant 0 : i32
    %c0_i32_0 = arith.constant 0 : i32
    %c0_i32_1 = arith.constant 0 : i32
    return %c0_i32, %c0_i32_0 : i32, i32
  }
  func.func @transform_16(%arg0: i32, %arg1: i32) -> (i32, i32, i32) {
    %c0_i32 = arith.constant 0 : i32
    %c0_i32_0 = arith.constant 0 : i32
    %c0_i32_1 = arith.constant 0 : i32
    return %arg0, %c0_i32, %c0_i32_0 : i32, i32, i32
  }
}

</mosaic_0001>

<bundles_post_ra>
// kernel: _forward_device.1
= control target key start
LH: loop header
LB: loop body
LE: loop exit
PB: predicated region body
PF: predicated region fallthrough
CT: control target
= control target key end

     0   :  { %s2282_s21 = smov 0   ;;  %s2284_s22 = smov 0   ;;  %s2560_s0 = inlined_call_operand.vmem [shape: f32[2,8,32], index: 0, kind: input, shape index: {}]   ;;  %s2561_s1 = inlined_call_operand.vmem [shape: f32[2,1,8], index: 1, kind: input, shape index: {}]   ;;  %s2562_s2 = inlined_call_operand.vmem [shape: bf16[2,32,96], index: 2, kind: input, shape index: {}]   ;;  %s2563_s3 = inlined_call_operand.vmem [shape: f32[2,1,96], index: 3, kind: input, shape index: {}]   ;;  %s2564_s4 = inlined_call_operand.vmem [shape: bf16[2,32,32], index: 4, kind: input, shape index: {}]   ;;  %s2565_s5 = inlined_call_operand.vmem [shape: f32[2,1,32], index: 5, kind: input, shape index: {}]   ;;  %s2566_s6 = inlined_call_operand.vmem [shape: f32[2,1,32], index: 6, kind: input, shape index: {}]   ;;  %s2567_s7 = inlined_call_operand.vmem [shape: f32[2,1,32], index: 7, kind: input, shape index: {}]   ;;  %s2568_s8 = inlined_call_operand.vmem [shape: bf16[2,32,64], index: 8, kind: input, shape index: {}]   ;;  %s2569_s9 = inlined_call_operand.vmem [shape: f32[2,1,64], index: 9, kind: input, shape index: {}]   ;;  %s2570_s10 = inlined_call_operand.vmem [shape: bf16[2,64,32], index: 10, kind: input, shape index: {}]   ;;  %s2571_s11 = inlined_call_operand.vmem [shape: f32[2,1,32], index: 11, kind: input, shape index: {}]   ;;  %s2572_s12 = inlined_call_operand.vmem [shape: f32[2,1,32], index: 12, kind: input, shape index: {}]   ;;  %s2573_s13 = inlined_call_operand.vmem [shape: f32[2,1,32], index: 13, kind: input, shape index: {}]   ;;  %s2574_s14 = inlined_call_operand.vmem [shape: bf16[32,128], index: 14, kind: input, shape index: {}]   ;;  %s2575_s15 = inlined_call_operand.vmem [shape: f32[1,128], index: 15, kind: input, shape index: {}]   ;;  %s2576_s16 = inlined_call_operand.vmem [shape: f32[2,8,128], index: 16, kind: output, shape index: {}]  }
   0x1   :  { %2582 = sst [smem:[#allocation10_spill]] %s2560_s0  ;;  %s2286_s23 = smov 0  }
   0x2   :  { %2583 = sst [smem:[#allocation11_spill]] %s2561_s1  ;;  %s2288_s24 = smov 0  }
   0x3   :  { %2584 = sst [smem:[#allocation12_spill]] %s2562_s2  ;;  %s2290_s25 = smov 0  }
   0x4   :  { %2585 = sst [smem:[#allocation13_spill]] %s2564_s4 }
   0x5   :  { %2586 = sst [smem:[#allocation14_spill]] %s2567_s7 }
   0x6   :  { %2587 = sst [smem:[#allocation15_spill]] %s2568_s8 }
   0x7   :  { %2588 = sst [smem:[#allocation16_spill]] %s2569_s9 }
   0x8   :  { %2589 = sst [smem:[#allocation17_spill]] %s2572_s12 }
   0x9   :  { %2590 = sst [smem:[#allocation18_spill]] %s2573_s13 }
   0xa   :  { %2591 = sst [smem:[#allocation19_spill]] %s2574_s14 }
   0xb   :  { %2592 = sst [smem:[#allocation20_spill]] %s2575_s15 }
   0xc   :  { %2593 = sst [smem:[#allocation21_spill]] %s2576_s16 }
   0xd LB: > { %2594 = sst [smem:[#allocation4_spill]] %s2160_s21  ;;  %s35_s26 = sadd.s32 1, %s2168_s23  ;;  %s2176_s25 = sphi %s2290_s25, %s26_s25   ;;  %s2172_s24 = sphi %s2288_s24, %s2629_s24   ;;  %s2168_s23 = sphi %s2286_s23, %s2628_s23   ;;  %s2164_s22 = sphi %s2284_s22, %s2627_s22   ;;  %s2160_s21 = sphi %s2282_s21, %s2626_s21  }
   0xe   : > { %2595 = sst [smem:[#allocation5_spill]] %s2168_s23  ;;  %s38_s27 = sadd.s32 1, %s2172_s24 }
   0xf   : > { %2596 = sst [smem:[#allocation6_spill]] %s2172_s24  ;;  %p36_p0 = scmp.ge.s32.totalorder %s35_s26, 2 }
  0x10   : > { %2597 = sst [smem:[#allocation7_spill]] %s2176_s25  ;;  %p1862_p1 = scmp.ge.s32.totalorder %s2176_s25, 1 }
  0x11   : > { %p585_p2 = scmp.lt.s32.totalorder %s2176_s25, 5  ;;  %s2631_s26 = smov (%p36_p0, %s35_s26), 0 }
  0x12   : > { %2598 = sst [smem:[#allocation8_spill]] %s2631_s26  ;;  %s2633_s27 = smov (!%p36_p0, %s38_s27), %s2172_s24 }
  0x13   : > { %p586_p3 = pnand %p1862_p1, %p585_p2  ;;  %p40_p4 = scmp.ge.s32.totalorder %s2633_s27, 2 }
  0x14   : > { %p680_p5 = scmp.lt.s32.totalorder (!%p586_p3), %s2164_s22, 1  ;;  %p687_p6 = scmp.lt.s32.totalorder (!%p586_p3), %s2160_s21, 1 }
  0x15   : > { %s2635_s27 = smov (%p40_p4, %s2633_s27), 0  ;;  %589 = sbr.rel (%p586_p3) target bundleno = 3264 (0xcc0), region = 84 }
  0x16   : > { %2599 = sst [smem:[#allocation9_spill]] %s2635_s27  ;;  %s2601_s20 = sld [smem:[#allocation10_spill]] (!%p586_p3) }
  0x17   : > { %s2602_s2 = sld [smem:[#allocation12_spill]] (!%p586_p3)  ;;  %s2603_s4 = sld [smem:[#allocation13_spill]] (!%p586_p3) }
  0x18   : > { %s2605_s8 = sld [smem:[#allocation15_spill]] (!%p586_p3)  ;;  %s2607_s24 = sld [smem:[#allocation17_spill]] (!%p586_p3) }
  0x19   : > { %s2610_s30 = sld [smem:[#allocation4_spill]] (!%p586_p3) }
  0x1c   : > { %s2637_s22 = smov (!%p680_p5, %s2164_s22), 1 }
  0x1d   : > { %s2318_s28 = scalar_select %p687_p6, %s2160_s21, 1 }
  0x1e   : > { %s1863_s29 = sshll.u32 %s2637_s22, 3  ;;  %s2609_s21 = sld [smem:[#allocation21_spill]] }
  0x1f   : > { %s683_s27 = scalar_lea.vmem %s2601_s20, %s1863_s29  ;;  %s1912_s26 = sshll.u32 %s2318_s28, 4 }
  0x20   : > { %s691_s25 = scalar_lea.vmem %s2602_s2, %s1912_s26  ;;  %s2339_s12 = scalar_lea.vmem %s2603_s4, %s1912_s26 }
  0x21   : > { %s2356_s15 = scalar_lea.vmem %s2605_s8, %s1912_s26  ;;  %s1915_s4 = sshll.u32 %s2318_s28, 5 }
  0x22   : > { %s724_s17 = scalar_lea.vmem %s2571_s11, %s2318_s28  ;;  %s2370_s20 = scalar_lea.vmem %s2570_s10, %s1915_s4 }
  0x23   : > { %s727_s2 = scalar_lea.vmem %s2607_s24, %s2318_s28  ;;  %s2608_s8 = sld [smem:[#allocation18_spill]] }
  0x24   : > { %s2383_s9 = scalar_lea.vmem %s2609_s21, %s1863_s29  ;;  %p1873_p7 = scmp.ne.s32.totalorder %s2610_s30, 0 }
  0x25   : > { %v740_v0 = vld [vmem:[%s683_s27] sm:$0xff] (!%p1873_p7)  ;;  %vm741_vm0 = vcmask (!%p1873_p7), 261120  }
  0x26   : > { %739 = sbr.rel (%p1873_p7) target bundleno = 45 (0x2d), region = 88  ;;  %742 = vst.msk [vmem:[#allocation2] sm:$0xff] (!%p1873_p7), %vm741_vm0, %v740_v0 }
  0x29   : > { %s730_s7 = scalar_lea.vmem %s2608_s8, %s2318_s28 }
  0x2d PF: > { %v2100_v1 = vld [vmem:[%s691_s25] sm:$0xff]   ;;  %v2178_v2 = vmov 0.0   ;;  %v2101_v3 = vld [vmem:[%s691_s25 + $0x8] sm:$0xff]   ;;  %vm2179_vm1 = vmmov 0   ;;  %vm768_vm2 = vcmask 261120   ;;  %s2611_s21 = scalar_lea.vmem %s2563_s3, %s2318_s28  ;;  %s2180_s25 = smov 120  }
  0x2e   : > { %1949 = vmatprep.subr.bf16.mxu0 %v2178_v2  ;;  %1957 = vmatprep.subr.bf16.mxu1 %v2178_v2  ;;  %v2390_v4 = vld [vmem:[#allocation2] sm:$0xff]  ;;  %s2181_s27 = smov 96   ;;  %s2182_s29 = smov 80   ;;  %vm817_vm3 = vcmask 64512   ;;  %vm889_vm4 = vcmask 1043456   ;;  %vm1050_vm5 = vcmask 130112  }
  0x2f   : > { %1950 = vmatpush3.bf16.msra.mxu0 %v2100_v1  ;;  %1953 = vmatprep.mubr.msk.bf16.mxu0 %vm2179_vm1, %v2178_v2  ;;  %v744_v5 = vpack.c.bf16 %v2390_v4, %v2390_v4  ;;  %v1874_v6 = vld [vmem:[%s2611_s21] ss:$0 sm:$0xff]  ;;  %s2183_s24 = smov 88   ;;  %s2184_s0 = smov 72   ;;  %vm1168_vm6 = vcmask 195712   ;;  %vm1286_vm7 = vcmask 261312  }
  0x30   : > { %1951 = vmatprep.subr.bf16.mxu0 %v2178_v2  ;;  %1959 = vmatprep.mubr.msk.bf16.mxu1 %vm2179_vm1, %v2178_v2  ;;  %s2185_s18 = smov 112   ;;  %s2186_s19 = smov 104   ;;  %vm1495_vm8 = vcmask 523264  }
  0x31   : > { %s2612_s26 = sld [smem:[#allocation11_spill]]  ;;  %s2188_s13 = smov 64  }
  0x32   : > { %s2189_s16 = smov 40   ;;  %s2190_s30 = smov 48  }
  0x33   : > { %1952 = vmatpush3.bf16.msra.mxu0 %v2101_v3  ;;  %s2191_s4 = smov 8   ;;  %s2192_s8 = smov 16  }
  0x34   : > { %1963 = vmatprep.subr.bf16.mxu0 %v2178_v2  ;;  %s2193_s21 = smov 24  }
  0x36   : > { %1954 = vmatmul.mubr.msk.bf16.vlgmr.msra.gmra.mrb[0].mxu0 %vm768_vm2, %v744_v5 }
  0x37   : > { %1965 = vmatprep.mubr.msk.bf16.mxu0 %vm2179_vm1, %v2178_v2  ;;  %s2613_s14 = scalar_lea.vmem %s2612_s26, %s2637_s22  ;;  %s2187_s22 = smov 56  }
  0x38   : > { %v1879_v25 = vld [vmem:[%s2613_s14] ss:$0 sm:$0xff]  ;;  %s2618_s14 = sld [smem:[#allocation16_spill]] }
 0x109   : > { %v806_v7 = vpop.f32.mrb[0].mxu0 }
 0x10a   : > { %v807_v8 = vadd.f32 %v1874_v6, %v806_v7  ;;  %v1955_v9 = vpop.f32.mrb[1].mxu0 }
 0x10b   : > { %v809_v10 = vpop.f32.mrb[2].mxu0 }
 0x10c   : > { %v2406_v11 = vpack.c.bf16 %v807_v8, %v807_v8  ;;  %v1956_v12 = vpop.f32.mrb[3].mxu0 }
 0x10e   : > { %934 = vrot.lane.b32.xlu1 %v2406_v11, %s2180_s25  ;;  %815 = vrot.lane.b32.xlu0 %v2406_v11, %s2181_s27  ;;  %s2614_s27 = scalar_lea.vmem %s2565_s5, %s2318_s28 }
 0x112   : > { %1054 = vrot.lane.b32.xlu1 %v2406_v11, %s2182_s29  ;;  %936 = vrot.lane.b32.xlu0 %v2406_v11, %s2183_s24 }
 0x116   : > { %1172 = vrot.lane.b32.xlu1 %v2406_v11, %s2184_s0  ;;  %1052 = vrot.lane.b32.xlu0 %v2406_v11, %s2185_s18 }
 0x11a   : > { %1170 = vrot.lane.b32.xlu0 %v2406_v11, %s2186_s19  ;;  %s2616_s19 = sld [smem:[#allocation14_spill]] }
 0x120   : > { %s2617_s1 = scalar_lea.vmem %s2616_s19, %s2318_s28 }
 0x180   : > { %v816_v13 = vpop.permute.xlu0 %815  ;;  %v935_v16 = vpop.permute.xlu1 %934 }
 0x181   : > { %v822_v14 = vsel %vm817_vm3, %v816_v13, 0 }
 0x182   : > { %1958 = vmatpush3.bf16.xpose.msra.mxu1 %v822_v14 }
 0x183   : > { %1969 = vmatprep.subr.bf16.mxu1 %v2178_v2 }
 0x184   : > { %v937_v15 = vpop.permute.xlu0 %936  ;;  %v1055_v18 = vpop.permute.xlu1 %1054 }
 0x185   : > { %v942_v17 = vsel %vm817_vm3, %v937_v15, 0  ;;  %v1060_v19 = vsel %vm817_vm3, %v1055_v18, 0 }
 0x188   : > { %v1173_v20 = vpop.permute.xlu1 %1172  ;;  %v1053_v21 = vpop.permute.xlu0 %1052 }
 0x189   : > { %1960 = vmatmul.mubr.msk.bf16.vlgmr.msra.gmra.mrb[0].mxu1 %vm817_vm3, %v2406_v11  ;;  %v1178_v22 = vsel %vm817_vm3, %v1173_v20, 0 }
 0x18a   : > { %1970 = vmatpush3.bf16.xpose.msra.mxu1 %v942_v17  ;;  %1971 = vmatprep.mubr.msk.bf16.mxu1 %vm2179_vm1, %v2178_v2 }
 0x18b   : > { %1981 = vmatprep.subr.bf16.mxu1 %v2178_v2 }
 0x18c   : > { %v1171_v23 = vpop.permute.xlu0 %1170 }
 0x191   : > { %1972 = vmatmul.mubr.msk.bf16.vlgmr.msra.gmra.mrb[4].mxu1 %vm817_vm3, %v935_v16 }
 0x192   : > { %1982 = vmatpush3.bf16.xpose.msra.mxu1 %v1060_v19  ;;  %1983 = vmatprep.mubr.msk.bf16.mxu1 %vm2179_vm1, %v2178_v2 }
 0x193   : > { %1993 = vmatprep.subr.bf16.mxu1 %v2178_v2 }
 0x199   : > { %1984 = vmatmul.mubr.msk.bf16.vlgmr.msra.gmra.mrb[8].mxu1 %vm817_vm3, %v1053_v21 }
 0x19a   : > { %1994 = vmatpush3.bf16.xpose.msra.mxu1 %v1178_v22  ;;  %1995 = vmatprep.mubr.msk.bf16.mxu1 %vm2179_vm1, %v2178_v2 }
 0x19b   : > { %2005 = vmatprep.subr.bf16.mxu1 %v2178_v2 }
 0x1a1   : > { %1996 = vmatmul.mubr.msk.bf16.vlgmr.msra.gmra.mrb[12].mxu1 %vm817_vm3, %v1171_v23 }
 0x1a2   : > { %2009 = vmatprep.mubr.msk.bf16.mxu1 %vm2179_vm1, %v2178_v2 }
 0x25c   : > { %v858_v24 = vpop.f32.mrb[0].mxu1 }
 0x25d   : > { %v864_v26 = vmul.f32 0.35355338, %v858_v24  ;;  %v1961_v27 = vpop.f32.mrb[1].mxu1 }
 0x25e   : > { %v861_v28 = vpop.f32.mrb[2].mxu1 }
 0x25f   : > { %v1962_v29 = vpop.f32.mrb[3].mxu1  ;;  %v871_v30 = vadd.f32 %v1879_v25, %v864_v26 }
 0x261   : > { %v872_v31 = vsel %vm817_vm3, %v871_v30, -inf }
 0x262   : > { %873 = vmax.xlane.f32.xlu1 %v872_v31 }
 0x264   : > { %v978_v32 = vpop.f32.mrb[4].mxu1 }
 0x265   : > { %v984_v33 = vmul.f32 0.35355338, %v978_v32  ;;  %v1973_v34 = vpop.f32.mrb[5].mxu1 }
 0x266   : > { %v981_v35 = vpop.f32.mrb[6].mxu1 }
 0x267   : > { %v1974_v36 = vpop.f32.mrb[7].mxu1  ;;  %v985_v37 = vadd.f32 %v1879_v25, %v984_v33 }
 0x269   : > { %v986_v38 = vsel %vm817_vm3, %v985_v37, -inf }
 0x26a   : > { %987 = vmax.xlane.f32.xlu0 %v986_v38 }
 0x26c   : > { %v1096_v39 = vpop.f32.mrb[8].mxu1 }
 0x26d   : > { %v1102_v40 = vmul.f32 0.35355338, %v1096_v39  ;;  %v1985_v41 = vpop.f32.mrb[9].mxu1 }
 0x26e   : > { %v1099_v42 = vpop.f32.mrb[10].mxu1 }
 0x26f   : > { %v1986_v43 = vpop.f32.mrb[11].mxu1  ;;  %v1103_v44 = vadd.f32 %v1879_v25, %v1102_v40 }
 0x270   : > { %v2102_v43 = vld [vmem:[%s2339_s12] sm:$0xff]  }
 0x271   : > { %v1104_v45 = vsel %vm817_vm3, %v1103_v44, -inf  ;;  %2006 = vmatpush3.bf16.msra.mxu1 %v2102_v43 }
 0x272   : > { %1105 = vmax.xlane.f32.xlu0 %v1104_v45  ;;  %2007 = vmatprep.subr.bf16.mxu1 %v2178_v2 }
 0x274   : > { %v1214_v46 = vpop.f32.mrb[12].mxu1 }
 0x275   : > { %v1220_v47 = vmul.f32 0.35355338, %v1214_v46  ;;  %v1997_v48 = vpop.f32.mrb[13].mxu1 }
 0x276   : > { %v1217_v49 = vpop.f32.mrb[14].mxu1 }
 0x277   : > { %v1998_v50 = vpop.f32.mrb[15].mxu1  ;;  %v1221_v51 = vadd.f32 %v1879_v25, %v1220_v47 }
 0x279   : > { %v1222_v52 = vsel %vm817_vm3, %v1221_v51, -inf }
 0x27a   : > { %1223 = vmax.xlane.f32.xlu1 %v1222_v52 }
 0x2ef   : > { %v874_v53 = vpop.xlane.xlu1 %873 }
 0x2f0   : > { %v875_v54 = vsub.f32 %v871_v30, %v874_v53 }
 0x2f2   : > { %v876_v55 = vmul.f32 1.442695, %v875_v54 }
 0x2f4   : > { %2110 = vpow2.f32 %v876_v55 }
 0x2f7   : > { %v988_v56 = vpop.xlane.xlu0 %987 }
 0x2f8   : > { %v989_v57 = vsub.f32 %v985_v37, %v988_v56 }
 0x2fa   : > { %v990_v58 = vmul.f32 1.442695, %v989_v57 }
 0x2fc   : > { %2112 = vpow2.f32 %v990_v58  ;;  %v1887_v58 = vld [vmem:[%s2614_s27] ss:$0 sm:$0xff] }
 0x2fe   : > { %v2111_v59 = vpop.eup %2110 }
 0x2ff   : > { %v1106_v60 = vpop.xlane.xlu0 %1105  ;;  %v878_v61 = vsel %vm817_vm3, %v2111_v59, 0.0 }
 0x300   : > { %v1107_v62 = vsub.f32 %v1103_v44, %v1106_v60  ;;  %879 = vadd.xlane.f32.xlu0 %v878_v61  ;;  %v2103_v44 = vld [vmem:[%s2339_s12 + $0x8] sm:$0xff]   ;;  %s2622_s12 = sld [smem:[#allocation4_spill]] }
 0x301   : > { %2008 = vmatpush3.bf16.msra.mxu1 %v2103_v44 }
 0x302   : > { %v1108_v63 = vmul.f32 1.442695, %v1107_v62  ;;  %2021 = vmatprep.subr.bf16.mxu1 %v2178_v2 }
 0x304   : > { %2114 = vpow2.f32 %v1108_v63 }
 0x306   : > { %v2113_v0 = vpop.eup %2112  ;;  %p1905_p8 = scmp.ne.s32.totalorder %s2622_s12, 1 }
 0x307   : > { %v992_v1 = vsel %vm817_vm3, %v2113_v0, 0.0  ;;  %v1224_v6 = vpop.xlane.xlu1 %1223  ;;  %s2623_s29 = sld [smem:[#allocation19_spill]] (!%p1905_p8)  ;;  %vm2195_vm9 = vmmov (!%p1905_p8), 0  }
 0x308   : > { %993 = vadd.xlane.f32.xlu1 %v992_v1  ;;  %v1225_v7 = vsub.f32 %v1221_v51, %v1224_v6 }
 0x30a   : > { %v1226_v8 = vmul.f32 1.442695, %v1225_v7 }
 0x30c   : > { %2116 = vpow2.f32 %v1226_v8 }
 0x30e   : > { %v2115_v3 = vpop.eup %2114 }
 0x30f   : > { %v1110_v5 = vsel %vm817_vm3, %v2115_v3, 0.0 }
 0x310   : > { %1111 = vadd.xlane.f32.xlu0 %v1110_v5 }
 0x316   : > { %v2117_v9 = vpop.eup %2116 }
 0x317   : > { %v1228_v10 = vsel %vm817_vm3, %v2117_v9, 0.0 }
 0x319   : > { %998 = vrot.lane.b32.xlu1 %v2406_v11, %s2187_s22  ;;  %s2619_s22 = scalar_lea.vmem %s2618_s14, %s2318_s28 }
 0x326   : > { %884 = vrot.lane.b32.xlu0 %v2406_v11, %s2188_s13 }
 0x32a   : > { %1234 = vrot.lane.b32.xlu0 %v2406_v11, %s2189_s16 }
 0x33d   : > { %1229 = vadd.xlane.f32.xlu1 %v1228_v10  ;;  %v2105_v10 = vld [vmem:[%s2356_s15 + $0x8] sm:$0xff]  }
 0x34e   : > { %1116 = vrot.lane.b32.xlu1 %v2406_v11, %s2190_s30 }
 0x38d   : > { %v880_v12 = vpop.xlane.xlu0 %879 }
 0x38e   : > { %2118 = vrcp.f32 %v880_v12  ;;  %v2107_v12 = vld [vmem:[%s2370_s20 + $0x8] sm:$0xff]  }
 0x395   : > { %v994_v13 = vpop.xlane.xlu1 %993 }
 0x396   : > { %2120 = vrcp.f32 %v994_v13 }
 0x398   : > { %v2119_v14 = vpop.eup %2118 }
 0x399   : > { %v882_v16 = vmul.f32 %v2119_v14, %v2111_v59  ;;  %v999_v19 = vpop.permute.xlu1 %998 }
 0x39a   : > { %v1004_v22 = vsel %vm889_vm4, %v999_v19, 0  ;;  %v1892_v19 = vld [vmem:[%s2617_s1] ss:$0 sm:$0xff] }
 0x39b   : > { %v883_v20 = vpack.c.bf16 %v882_v16, %v882_v16 }
 0x39d   : > { %v1112_v15 = vpop.xlane.xlu0 %1111 }
 0x39e   : > { %2122 = vrcp.f32 %v1112_v15 }
 0x3a0   : > { %v2121_v21 = vpop.eup %2120 }
 0x3a1   : > { %v885_v17 = vpop.permute.xlu0 %884  ;;  %v996_v11 = vmul.f32 %v2121_v21, %v2113_v0 }
 0x3a2   : > { %v891_v18 = vsel %vm889_vm4, %v885_v17, 0 }
 0x3a3   : > { %1964 = vmatpush3.bf16.msra.mxu0 %v891_v18  ;;  %v997_v23 = vpack.c.bf16 %v996_v11, %v996_v11  ;;  %v2108_v11 = vld [vmem:[%s2370_s20 + $0x10] sm:$0xff]  }
 0x3a4   : > { %1975 = vmatprep.subr.bf16.mxu0 %v2178_v2 }
 0x3a5   : > { %v1235_v29 = vpop.permute.xlu0 %1234 }
 0x3a6   : > { %1966 = vmatmul.mubr.msk.bf16.vlgmr.msra.gmra.mrb[4].mxu0 %vm817_vm3, %v883_v20  ;;  %v1240_v31 = vsel %vm889_vm4, %v1235_v29, 0 }
 0x3a7   : > { %1976 = vmatpush3.bf16.msra.mxu0 %v1004_v22  ;;  %1977 = vmatprep.mubr.msk.bf16.mxu0 %vm2179_vm1, %v2178_v2 }
 0x3a8   : > { %1987 = vmatprep.subr.bf16.mxu0 %v2178_v2  ;;  %v2123_v24 = vpop.eup %2122 }
 0x3a9   : > { %v1114_v26 = vmul.f32 %v2123_v24, %v2115_v3  ;;  %v1893_v24 = vld [vmem:[%s2619_s22] ss:$0 sm:$0xff] }
 0x3ab   : > { %v1115_v30 = vpack.c.bf16 %v1114_v26, %v1114_v26 }
 0x3ae   : > { %1978 = vmatmul.mubr.msk.bf16.vlgmr.msra.gmra.mrb[8].mxu0 %vm817_vm3, %v997_v23  ;;  %v2109_v23 = vld [vmem:[%s2370_s20 + $0x18] sm:$0xff]  }
 0x3af   : > { %1989 = vmatprep.mubr.msk.bf16.mxu0 %vm2179_vm1, %v2178_v2 }
 0x3ca   : > { %v1230_v25 = vpop.xlane.xlu1 %1229 }
 0x3cb   : > { %2124 = vrcp.f32 %v1230_v25 }
 0x3ce   : > { %v1117_v27 = vpop.permute.xlu1 %1116 }
 0x3cf   : > { %v1122_v28 = vsel %vm889_vm4, %v1117_v27, 0 }
 0x3d0   : > { %1988 = vmatpush3.bf16.msra.mxu0 %v1122_v28 }
 0x3d1   : > { %1999 = vmatprep.subr.bf16.mxu0 %v2178_v2 }
 0x3d3   : > { %1990 = vmatmul.mubr.msk.bf16.vlgmr.msra.gmra.mrb[12].mxu0 %vm817_vm3, %v1115_v30 }
 0x3d4   : > { %2000 = vmatpush3.bf16.msra.mxu0 %v1240_v31  ;;  %2001 = vmatprep.mubr.msk.bf16.mxu0 %vm2179_vm1, %v2178_v2 }
 0x3d5   : > { %v2125_v32 = vpop.eup %2124  ;;  %2013 = vmatprep.subr.bf16.mxu0 %v2178_v2 }
 0x3d6   : > { %v1232_v33 = vmul.f32 %v2125_v32, %v2117_v9  ;;  %v2104_v9 = vld [vmem:[%s2356_s15] sm:$0xff]   ;;  %s2615_s15 = scalar_lea.vmem %s2566_s6, %s2318_s28 }
 0x3d7   : > { %v1891_v17 = vld [vmem:[%s2615_s15] ss:$0 sm:$0xff]  ;;  %s2624_s15 = sld [smem:[#allocation20_spill]] (!%p1905_p8) }
 0x3d8   : > { %v1233_v34 = vpack.c.bf16 %v1232_v33, %v1232_v33 }
 0x3db   : > { %2002 = vmatmul.mubr.msk.bf16.vlgmr.msra.gmra.mrb[16].mxu0 %vm817_vm3, %v1233_v34 }
 0x3dc   : > { %2017 = vmatprep.mubr.msk.bf16.mxu0 %vm2179_vm1, %v2178_v2  ;;  %2014 = vmatpush3.bf16.msra.mxu0 %v2104_v9  ;;  %v2196_v9 = vmov (!%p1905_p8), 1  }
 0x3dd   : > { %2015 = vmatprep.subr.bf16.mxu0 %v2178_v2  ;;  %2130 = vset.pattern.permute.xlu1 (!%p1905_p8), %v2196_v9 }
 0x3de   : > { %2131 = vset.pattern.permute.xlu0 (!%p1905_p8), %v2196_v9 }
 0x3e0   : > { %2016 = vmatpush3.bf16.msra.mxu0 %v2105_v10 }
 0x479   : > { %v927_v35 = vpop.f32.mrb[4].mxu0 }
 0x47a   : > { %933 = vst.msk [vmem:[#allocation3] sm:$0xff] %vm817_vm3, %v927_v35  ;;  %v1967_v36 = vpop.f32.mrb[5].mxu0 }
 0x47b   : > { %v930_v37 = vpop.f32.mrb[6].mxu0 }
 0x47c   : > { %v1968_v38 = vpop.f32.mrb[7].mxu0 }
 0x481   : > { %v1040_v39 = vpop.f32.mrb[8].mxu0 }
 0x482   : > { %1047 = vrot.lane.b32.xlu1 %v1040_v39, %s2191_s4  ;;  %v1979_v40 = vpop.f32.mrb[9].mxu0 }
 0x483   : > { %v1043_v41 = vpop.f32.mrb[10].mxu0 }
 0x484   : > { %v1980_v42 = vpop.f32.mrb[11].mxu0 }
 0x4a6   : > { %v1158_v45 = vpop.f32.mrb[12].mxu0 }
 0x4a7   : > { %1165 = vrot.lane.b32.xlu0 %v1158_v45, %s2192_s8  ;;  %v1991_v46 = vpop.f32.mrb[13].mxu0 }
 0x4a8   : > { %v1161_v47 = vpop.f32.mrb[14].mxu0 }
 0x4a9   : > { %v1992_v48 = vpop.f32.mrb[15].mxu0 }
 0x4aa   : > { %v1903_v48 = vld [vmem:[%s727_s2] ss:$0 sm:$0xff] }
 0x4ae   : > { %v1276_v49 = vpop.f32.mrb[16].mxu0 }
 0x4af   : > { %1283 = vrot.lane.b32.xlu1 %v1276_v49, %s2193_s21  ;;  %v2003_v50 = vpop.f32.mrb[17].mxu0 }
 0x4b0   : > { %v1279_v51 = vpop.f32.mrb[18].mxu0  ;;  %v1904_v50 = vld [vmem:[%s730_s7] ss:$0 sm:$0xff] }
 0x4b1   : > { %v2004_v52 = vpop.f32.mrb[19].mxu0 }
 0x4f4   : > { %v1048_v53 = vpop.permute.xlu1 %1047 }
 0x4f5   : > { %1051 = vst.msk [vmem:[#allocation3] sm:$0xff] %vm1050_vm5, %v1048_v53  ;;  %v2132_v53 = vld [vmem:[%s2623_s29] sm:$0xff] (!%p1905_p8)  }
 0x519   : > { %v1166_v54 = vpop.permute.xlu0 %1165 }
 0x51a   : > { %1169 = vst.msk [vmem:[#allocation3] sm:$0xff] %vm1168_vm6, %v1166_v54  ;;  %v2194_v54 = vmov (!%p1905_p8), 0.0  }
 0x51b   : > { %2033 = vmatprep.subr.bf16.mxu0 (!%p1905_p8), %v2194_v54 }
 0x521   : > { %v1284_v55 = vpop.permute.xlu1 %1283 }
 0x522   : > { %1287 = vst.msk [vmem:[#allocation3] sm:$0xff] %vm1286_vm7, %v1284_v55  ;;  %v2133_v55 = vld [vmem:[%s2623_s29 + $0x8] sm:$0xff] (!%p1905_p8)  }
 0x529   : > { %v1288_v56 = vld [vmem:[#allocation3] sm:$0xff] }
 0x52a   : > { %v1289_v57 = vpack.c.bf16 %v1288_v56, %v1288_v56 }
 0x52c   : > { %2010 = vmatmul.mubr.msk.bf16.vlgmr.msra.gmra.mrb[16].mxu1 %vm768_vm2, %v1289_v57  ;;  %v1641_v57 = vlaneseq (!%p1905_p8) }
 0x52d   : > { %2029 = vmatprep.mubr.msk.bf16.mxu1 %vm2179_vm1, %v2178_v2 }
 0x5ff   : > { %v1350_v59 = vpop.f32.mrb[16].mxu1 }
 0x600   : > { %v1351_v60 = vadd.f32 %v1887_v58, %v1350_v59  ;;  %v2011_v61 = vpop.f32.mrb[17].mxu1  ;;  %v1642_v58 = vand.u32 (!%p1905_p8), 127, %v1641_v57  ;;  %v1906_v59 = vld [vmem:[%s2624_s15] ss:$0 sm:$0xff] (!%p1905_p8) }
 0x601   : > { %v1353_v62 = vpop.f32.mrb[18].mxu1 }
 0x602   : > { %v2012_v63 = vpop.f32.mrb[19].mxu1  ;;  %v1356_v0 = vadd.f32 %v1351_v60, %v2390_v4  ;;  %v2106_v4 = vld [vmem:[%s2370_s20] sm:$0xff]   ;;  %vm1643_vm10 = vcmp.lt.s32.totalorder (!%p1905_p8), %v1642_v58, 2  ;;  %vm1657_vm12 = vcmp.eq.s32.totalorder (!%p1905_p8), %v1642_v58, 2 }
 0x603   : > { %2022 = vmatpush3.bf16.msra.mxu1 %v2106_v4 }
 0x604   : > { %v1359_v1 = vsel %vm768_vm2, %v1356_v0, 0.0  ;;  %2023 = vmatprep.subr.bf16.mxu1 %v2178_v2 }
 0x605   : > { %1360 = vadd.xlane.f32.xlu0 %v1359_v1 }
 0x607   : > { %2024 = vmatpush3.bf16.msra.mxu1 %v2107_v12 }
 0x608   : > { %2025 = vmatprep.subr.bf16.mxu1 %v2178_v2 }
 0x60b   : > { %2026 = vmatpush3.bf16.msra.mxu1 %v2108_v11 }
 0x60c   : > { %2027 = vmatprep.subr.bf16.mxu1 %v2178_v2  ;;  %v1897_v2 = vld [vmem:[%s724_s17] ss:$0 sm:$0xff] }
 0x60f   : > { %2028 = vmatpush3.bf16.msra.mxu1 %v2109_v23 }
 0x692   : > { %v1361_v3 = vpop.xlane.xlu0 %1360 }
 0x693   : > { %v1363_v5 = vmul.f32 0.03125, %v1361_v3 }
 0x695   : > { %v1364_v6 = vsub.f32 %v1356_v0, %v1363_v5 }
 0x697   : > { %v1365_v7 = vmul.f32 %v1364_v6, %v1364_v6 }
 0x699   : > { %v1366_v8 = vsel %vm768_vm2, %v1365_v7, 0.0 }
 0x69a   : > { %1367 = vadd.xlane.f32.xlu1 %v1366_v8 }
 0x727   : > { %v1368_v13 = vpop.xlane.xlu1 %1367 }
 0x728   : > { %v1369_v14 = vmul.f32 0.03125, %v1368_v13 }
 0x72a   : > { %v1370_v15 = vadd.f32 1e-05, %v1369_v14 }
 0x72c   : > { %2126 = vrsqrt.f32 %v1370_v15 }
 0x736   : > { %v2127_v16 = vpop.eup %2126 }
 0x737   : > { %v1372_v18 = vmul.f32 %v2127_v16, %v1364_v6 }
 0x739   : > { %v1379_v20 = vmul.f32 %v1891_v17, %v1372_v18 }
 0x73b   : > { %v1386_v21 = vadd.f32 %v1892_v19, %v1379_v20 }
 0x73d   : > { %v1387_v22 = vpack.c.bf16 %v1386_v21, %v1386_v21 }
 0x73f   : > { %2018 = vmatmul.mubr.msk.bf16.vlgmr.msra.gmra.mrb[20].mxu0 %vm768_vm2, %v1387_v22 }
 0x740   : > { %2034 = vmatpush3.bf16.msra.mxu0 (!%p1905_p8), %v2132_v53  ;;  %2037 = vmatprep.mubr.msk.bf16.mxu0 (!%p1905_p8), %vm2195_vm9, %v2194_v54 }
 0x741   : > { %2035 = vmatprep.subr.bf16.mxu0 (!%p1905_p8), %v2194_v54 }
 0x744   : > { %2036 = vmatpush3.bf16.msra.mxu0 (!%p1905_p8), %v2133_v55 }
 0x812   : > { %v1448_v25 = vpop.f32.mrb[20].mxu0 }
 0x813   : > { %v1449_v26 = vadd.f32 %v1893_v24, %v1448_v25  ;;  %v2019_v27 = vpop.f32.mrb[21].mxu0 }
 0x814   : > { %v1451_v28 = vpop.f32.mrb[22].mxu0 }
 0x815   : > { %v1454_v29 = vmax.f32 %v1449_v26, 0.0  ;;  %v2020_v30 = vpop.f32.mrb[23].mxu0 }
 0x817   : > { %v1455_v31 = vpack.c.bf16 %v1454_v29, %v1454_v29 }
 0x819   : > { %2030 = vmatmul.mubr.msk.bf16.vlgmr.msra.gmra.mrb[20].mxu1 %vm1495_vm8, %v1455_v31 }
 0x8ec   : > { %v1533_v32 = vpop.f32.mrb[20].mxu1 }
 0x8ed   : > { %v1534_v33 = vadd.f32 %v1897_v2, %v1533_v32  ;;  %v2031_v34 = vpop.f32.mrb[21].mxu1 }
 0x8ee   : > { %v1536_v35 = vpop.f32.mrb[22].mxu1 }
 0x8ef   : > { %v2032_v36 = vpop.f32.mrb[23].mxu1  ;;  %v1539_v37 = vadd.f32 %v1534_v33, %v1386_v21 }
 0x8f1   : > { %v1542_v38 = vsel %vm768_vm2, %v1539_v37, 0.0 }
 0x8f2   : > { %1543 = vadd.xlane.f32.xlu0 %v1542_v38 }
 0x97f   : > { %v1544_v39 = vpop.xlane.xlu0 %1543 }
 0x980   : > { %v1545_v40 = vmul.f32 0.03125, %v1544_v39 }
 0x982   : > { %v1546_v41 = vsub.f32 %v1539_v37, %v1545_v40 }
 0x984   : > { %v1547_v42 = vmul.f32 %v1546_v41, %v1546_v41 }
 0x986   : > { %v1548_v43 = vsel %vm768_vm2, %v1547_v42, 0.0 }
 0x987   : > { %1549 = vadd.xlane.f32.xlu0 %v1548_v43 }
 0xa14   : > { %v1550_v44 = vpop.xlane.xlu0 %1549 }
 0xa15   : > { %v1551_v45 = vmul.f32 0.03125, %v1550_v44 }
 0xa17   : > { %v1552_v46 = vadd.f32 1e-05, %v1551_v45 }
 0xa19   : > { %2128 = vrsqrt.f32 %v1552_v46 }
 0xa23   : > { %v2129_v47 = vpop.eup %2128 }
 0xa24   : > { %v1554_v49 = vmul.f32 %v2129_v47, %v1546_v41  ;;  %1573 = sbr.rel (%p1905_p8) target bundleno = 3264 (0xcc0), region = 92 }
 0xa26   : > { %v1561_v51 = vmul.f32 %v1903_v48, %v1554_v49 }
 0xa28   : > { %v1568_v52 = vadd.f32 %v1904_v50, %v1561_v51 }
 0xa2a   : > { %1569 = vst.msk [vmem:[#allocation2] sm:$0xff] %vm768_vm2, %v1568_v52  ;;  %v1574_v56 = vpack.c.bf16 (!%p1905_p8), %v1568_v52, %v1568_v52 }
 0xa2c   : > { %2038 = vmatmul.mubr.msk.bf16.vlgmr.msra.gmra.mrb[0].mxu0 %vm768_vm2, %v1574_v56 }
 0xaff   : > { %v1635_v60 = vpop.f32.mrb[0].mxu0 }
 0xb00   : > { %v1636_v61 = vadd.f32 %v1906_v59, %v1635_v60  ;;  %v2039_v62 = vpop.f32.mrb[1].mxu0 }
 0xb01   : > { %v1638_v63 = vpop.f32.mrb[2].mxu0 }
 0xb02   : > { %v2040_v0 = vpop.f32.mrb[3].mxu0  ;;  %v1644_v1 = vsel %vm1643_vm10, %v1636_v61, -1e+09 }
 0xb03   : > { %1645 = vmax.xlane.f32.xlu0 %v1644_v1 }
 0xb90   : > { %v1646_v3 = vpop.xlane.xlu0 %1645 }
 0xb91   : > { %v1647_v5 = vsub.f32 %v1644_v1, %v1646_v3 }
 0xb93   : > { %v1648_v6 = vmul.f32 1.442695, %v1647_v5 }
 0xb95   : > { %2134 = vpow2.f32 %v1648_v6 }
 0xb9f   : > { %v2135_v7 = vpop.eup %2134 }
 0xba0   : > { %v1650_v8 = vsel %vm1643_vm10, %v2135_v7, 0.0 }
 0xba1   : > { %1651 = vadd.xlane.f32.xlu0 %v1650_v8 }
 0xc2e   : > { %v1652_v10 = vpop.xlane.xlu0 %1651 }
 0xc2f   : > { %2136 = vrcp.f32 %v1652_v10 }
 0xc39   : > { %v2137_v4 = vpop.eup %2136 }
 0xc3a   : > { %v1654_v12 = vmul.f32 %v2137_v4, %v1650_v8 }
 0xc3c   : > { %vm1655_vm11 = vcmp.gt.f32.partialorder %v1654_v12, 0.4 }
 0xc3d   : > { %v1656_v13 = vsel %vm1655_vm11, 1.0, %v2194_v54 }
 0xc3e   : > { %1660 = vperm.xlu1 %2130, %v1656_v13  }
 0xcbd   : > { %v1661_v14 = vpop.permute.xlu1 %1660 }
 0xcbe   : > { %v1663_v15 = vsel %vm1657_vm12, %v1661_v14, %v1636_v61 }
 0xcbf   : > { %1664 = vst [vmem:[%s2383_s9] sm:$0xff] %v1663_v15 }
 0xcc0 PF: > { %s2625_s0 = sld [smem:[#allocation7_spill]]  ;;  %s2626_s21 = sld [smem:[#allocation5_spill]] }
 0xcc1   : > { %s2627_s22 = sld [smem:[#allocation6_spill]]  ;;  %s2628_s23 = sld [smem:[#allocation8_spill]] }
 0xcc2   : > { %s2629_s24 = sld [smem:[#allocation9_spill]] }
 0xcc6   : > { %s26_s25 = sadd.s32 1, %s2625_s0  }
 0xcc7   : > { %p23_p9 = scmp.ge.s32.totalorder %s26_s25, 6  }
 0xcc9   :  { %25 = sbr.rel (!%p23_p9) target bundleno = 13 (0xd), region = 161 }

</bundles_post_ra>
